<compile_context>
chip_gen: v7x
topology: tpu7x:2x2x1
jax: 0.10.0
libtpu: 0.0.40
codegen_flags: <defaults>
</compile_context>

<pallas_src>
import functools

import jax
import jax.numpy as jnp
from jax.experimental import pallas as pl
from jax.experimental.pallas import tpu as pltpu


def _moving_avg_kernel(x_ref, o_ref, *, scale: int, c: int):
    # x_ref: (1, TILE, scale*C) block;  o_ref: (1, TILE, C) block.
    xr = x_ref[0]                                        # (TILE, scale*C)
    acc = xr[:, 0:c].astype(jnp.float32)
    for k in range(1, scale):                            # unrolled static lane slices
        acc = acc + xr[:, k * c:(k + 1) * c].astype(jnp.float32)
    o_ref[0] = (acc * (1.0 / scale)).astype(o_ref.dtype)


def _pick_tile_lout(l_out: int, row_bytes: int,
                    target_bytes: int = 2 * 1024 * 1024) -> int:
    """Largest multiple-of-8 divisor of l_out whose input tile <= target_bytes."""
    if l_out % 8 != 0:
        return l_out            # small / odd case: one full-extent block
    budget_rows = max(8, target_bytes // max(1, row_bytes))
    best = 8
    for d in range(8, l_out + 1, 8):
        if l_out % d == 0 and d <= budget_rows:
            best = d
    return best


def moving_avg(x, scale: int = 1, tile_lout=None):
    """Downsample series with average pooling along the sequence axis.

    x: (B, L, C). Returns (B, L // scale, C).
    """
    if x is None:
        return None
    b, l, c = x.shape
    l_out = l // scale
    assert l_out > 0, "sequence length must be >= scale"

    itemsize = jnp.dtype(x.dtype).itemsize
    if tile_lout is None:
        tile_lout = _pick_tile_lout(l_out, scale * c * itemsize)
    assert l_out % tile_lout == 0, "tile_lout must divide L_out"
    assert tile_lout % 8 == 0 or tile_lout == l_out, "tile_lout must be 8-aligned"

    # Free, contiguous truncation + reshape outside the kernel:
    # (B, L, C) -> (B, L_out, scale*C). Matches avg_pool1d floor truncation.
    x_r = x[:, : l_out * scale, :].reshape(b, l_out, scale * c)

    kernel = functools.partial(_moving_avg_kernel, scale=scale, c=c)

    cost = pl.CostEstimate(
        flops=b * l_out * c * scale,                              # adds + scale-mul
        transcendentals=0,
        bytes_accessed=b * l_out * c * itemsize * (scale + 1),    # read + write
    )

    return pl.pallas_call(
        kernel,
        out_shape=jax.ShapeDtypeStruct((b, l_out, c), x.dtype),
        grid_spec=pl.GridSpec(
            grid=(b, l_out // tile_lout),
            in_specs=[pl.BlockSpec((1, tile_lout, scale * c),
                                   lambda i, j: (i, j, 0))],
            out_specs=pl.BlockSpec((1, tile_lout, c),
                                   lambda i, j: (i, j, 0)),
        ),
        compiler_params=pltpu.CompilerParams(
            dimension_semantics=("parallel", "parallel"),
        ),
        cost_estimate=cost,
    )(x_r)


if __name__ == "__main__":
    key = jax.random.PRNGKey(0)

    # Case 1: small shapes matching the module (L_out not 8-aligned -> full block).
    B, L, C = 2, 16, 8
    scale = 4
    x = jax.random.normal(key, (B, L, C), dtype=jnp.float32)
    out = jax.block_until_ready(moving_avg(x, scale=scale))
    l_out = L // scale
    ref = jnp.mean(x[:, : l_out * scale, :].reshape(B, l_out, scale, C), axis=2)
    assert out.shape == (B, l_out, C), out.shape
    assert jnp.allclose(out, ref, atol=1e-6, rtol=1e-6), "mismatch vs reference"

    # Case 2: scale=1 identity.
    out1 = jax.block_until_ready(moving_avg(x, scale=1))
    assert jnp.allclose(out1, x, atol=1e-6, rtol=1e-6)

    # Case 3: exercise the L_out-tiled multi-block grid path (grid = (2, 4)).
    B2, L2, C2, scale2 = 2, 128, 8, 4           # L_out = 32, force tile_lout = 8
    x2 = jax.random.normal(jax.random.PRNGKey(1), (B2, L2, C2), dtype=jnp.float32)
    out2 = jax.block_until_ready(moving_avg(x2, scale=scale2, tile_lout=8))
    l_out2 = L2 // scale2
    ref2 = jnp.mean(x2.reshape(B2, l_out2, scale2, C2), axis=2)
    assert jnp.allclose(out2, ref2, atol=1e-6, rtol=1e-6)

    # Case 4: L not divisible by scale (floor truncation like avg_pool1d).
    B3, L3, C3, scale3 = 2, 18, 8, 4
    x3 = jax.random.normal(jax.random.PRNGKey(2), (B3, L3, C3), dtype=jnp.float32)
    out3 = jax.block_until_ready(moving_avg(x3, scale=scale3))
    l_out3 = L3 // scale3
    ref3 = jnp.mean(
        x3[:, : l_out3 * scale3, :].reshape(B3, l_out3, scale3, C3), axis=2)
    assert out3.shape == (B3, l_out3, C3)
    assert jnp.allclose(out3, ref3, atol=1e-6, rtol=1e-6)

    # Case 5: bf16 input exercises f32 accumulation + cast-back path.
    x4 = jax.random.normal(jax.random.PRNGKey(3), (2, 32, 8), dtype=jnp.bfloat16)
    out4 = jax.block_until_ready(moving_avg(x4, scale=4))
    ref4 = jnp.mean(x4.astype(jnp.float32).reshape(2, 8, 4, 8), axis=2)
    assert jnp.allclose(out4.astype(jnp.float32), ref4, atol=2e-2, rtol=2e-2)

    print("KERNEL_OK")
</pallas_src>

<mosaic_0001>
module attributes {stable_mosaic.version = 11 : i64} {
  func.func @_moving_avg_kernel(%arg0: i32, %arg1: i32, %arg2: memref<1x4x32xf32, #tpu.memory_space<vmem>>, %arg3: memref<1x4x8xf32, #tpu.memory_space<vmem>>) attributes {dimension_semantics = [#tpu.dimension_semantics<parallel>, #tpu.dimension_semantics<parallel>], iteration_bounds = array<i64: 2, 1>, scalar_prefetch = 0 : i64, scratch_operands = 0 : i64, tpu.core_type = #tpu.core_type<tc>, window_params = [{transform_indices = @transform_0, window_bounds = array<i64: 1, 4, 32>}, {transform_indices = @transform_1, window_bounds = array<i64: 1, 4, 8>}]} {
    %c0 = arith.constant 0 : index
    %c0_0 = arith.constant 0 : index
    %c0_1 = arith.constant 0 : index
    %0 = vector.load %arg2[%c0, %c0_0, %c0_1] : memref<1x4x32xf32, #tpu.memory_space<vmem>>, vector<1x4x32xf32>
    %1 = vector.shape_cast %0 : vector<1x4x32xf32> to vector<4x32xf32>
    %2 = vector.extract_strided_slice %1 {offsets = [0, 0], sizes = [4, 8], strides = [1, 1]} : vector<4x32xf32> to vector<4x8xf32>
    %3 = vector.extract_strided_slice %1 {offsets = [0, 8], sizes = [4, 8], strides = [1, 1]} : vector<4x32xf32> to vector<4x8xf32>
    %4 = arith.addf %2, %3 : vector<4x8xf32>
    %5 = vector.extract_strided_slice %1 {offsets = [0, 16], sizes = [4, 8], strides = [1, 1]} : vector<4x32xf32> to vector<4x8xf32>
    %6 = arith.addf %4, %5 : vector<4x8xf32>
    %7 = vector.extract_strided_slice %1 {offsets = [0, 24], sizes = [4, 8], strides = [1, 1]} : vector<4x32xf32> to vector<4x8xf32>
    %8 = arith.addf %6, %7 : vector<4x8xf32>
    %cst = arith.constant 2.500000e-01 : f32
    %9 = vector.broadcast %cst : f32 to vector<4x8xf32>
    %10 = arith.mulf %8, %9 : vector<4x8xf32>
    %c0_2 = arith.constant 0 : index
    %c0_3 = arith.constant 0 : index
    %c0_4 = arith.constant 0 : index
    %11 = vector.load %arg3[%c0_2, %c0_3, %c0_4] : memref<1x4x8xf32, #tpu.memory_space<vmem>>, vector<1x4x8xf32>
    %12 = vector.shape_cast %11 : vector<1x4x8xf32> to vector<4x8xf32>
    %13 = vector.shape_cast %10 : vector<4x8xf32> to vector<1x4x8xf32>
    tpu.vector_store %arg3[%c0_2, %c0_3, %c0_4], %13 {strides = array<i32>} : memref<1x4x8xf32, #tpu.memory_space<vmem>>, vector<1x4x8xf32>,
    return
  }
  func.func @transform_0(%arg0: i32, %arg1: i32) -> (i32, i32, i32) {
    %c0_i32 = arith.constant 0 : i32
    %c0_i32_0 = arith.constant 0 : i32
    return %arg0, %arg1, %c0_i32 : i32, i32, i32
  }
  func.func @transform_1(%arg0: i32, %arg1: i32) -> (i32, i32, i32) {
    %c0_i32 = arith.constant 0 : i32
    %c0_i32_0 = arith.constant 0 : i32
    return %arg0, %arg1, %c0_i32 : i32, i32, i32
  }
}

</mosaic_0001>

<bundles_post_ra>
// kernel: tpu_custom_call.1
= control target key start
LH: loop header
LB: loop body
LE: loop exit
PB: predicated region body
PF: predicated region fallthrough
CT: control target
= control target key end

     0   :  { %6 = vsyncpa [#allocation3], 0  ;;  %s640_s0 = inlined_call_operand.hbm [shape: f32[2,4,32], index: 0, kind: input, shape index: {}]   ;;  %s641_s1 = inlined_call_operand.hbm [shape: f32[2,4,8], index: 1, kind: output, shape index: {}]  }
   0x1   :  { %8 = vsyncpa [#allocation3 + $0x1], 0 }
   0x2   :  { %9 = vsyncpa [#allocation4], 0 }
   0x3   :  { %11 = vsyncpa [#allocation4 + $0x1], 0  ;;  %s468_s6 = smov 0   ;;  %s470_s7 = smov 0  }
   0x4   :  { %s472_s8 = smov 0   ;;  %s474_s9 = smov 0  }
   0x5   :  { %s476_s10 = smov 0   ;;  %s478_s11 = smov 0  }
   0x6 LB: > { %s261_s12 = sadd.s32 4294967295, %s451_s11   ;;  %s262_s13 = sadd.s32 4294967294, %s451_s11   ;;  %s451_s11 = sphi %s478_s11, %s17_s11   ;;  %s447_s10 = sphi %s476_s10, %s657_s10   ;;  %s443_s9 = sphi %s474_s9, %s656_s9   ;;  %s439_s8 = sphi %s472_s8, %s655_s8   ;;  %s435_s7 = sphi %s470_s7, %s654_s7   ;;  %s431_s6 = sphi %s468_s6, %s653_s6  }
   0x7   : > { %s29_s14 = sadd.s32 1, %s447_s10  ;;  %s38_s15 = sadd.s32 1, %s439_s8 }
   0x8   : > { %p31_p0 = scmp.ge.s32.totalorder %s29_s14, 2  ;;  %p45_p1 = scmp.ne.s32.totalorder %s439_s8, %s435_s7 }
   0x9   : > { %p46_p2 = scmp.eq.s32.totalorder %s451_s11, 0  ;;  %p51_p3 = scmp.ne.s32.totalorder %s435_s7, %s431_s6 }
   0xa   : > { %s659_s14 = smov (%p31_p0, %s29_s14), 0  ;;  %p52_p5 = scmp.eq.s32.totalorder %s261_s12, 0 }
   0xb   : > { %p509_p4 = por %p46_p2, %p45_p1  ;;  %s33_s17 = ssub.s32 %s447_s10, %s659_s14 }
   0xc   : > { %p77_p6 = scmp.eq.s32.totalorder %s261_s12, 1  ;;  %p36_p7 = scmp.eq.s32.totalorder %s33_s17, 0 }
   0xd   : > { %p515_p8 = por %p52_p5, %p51_p3  ;;  %p83_p10 = scmp.eq.s32.totalorder %s262_s13, 1 }
   0xe   : > { %p519_p9 = por %p77_p6, %p45_p1  ;;  %p286_p13 = scmp.lt.s32.totalorder %s451_s11, 2 }
   0xf   : > { %s524_s20 = scalar_select %p36_p7, %s439_s8, %s38_s15  }
  0x10   : > { %s645_s19 = scalar_select %p519_p9, 1, 0 }
  0x11   : > { %p526_p11 = por %p83_p10, %p51_p3  ;;  %s103_s22 = sand.u32 1, %s439_s8  }
  0x12   : > { %s265_s23 = sshll.u32 %s103_s22, 2  ;;  %s266_s24 = sshll.u32 %s447_s10, 6 }
  0x13   : > { %s646_s21 = scalar_select %p526_p11, 1, 0 }
  0x14   : > { %s537_s27 = scalar_lea.hbm %s640_s0, %s266_s24  ;;  %s107_s28 = scalar_lea.vmem [#allocation2], %s265_s23 }
  0x15   : > { %s115_s29 = sshll.u32 %s107_s28, 4  ;;  %p543_p0 = pnand %p286_p13, %p509_p4  ;;  %s539_s29 = int_to_ptr.vmem [resolvable:$true] %s115_s29 }
  0x16   : > { %s104_s2 = scalar_lea.sflag [#allocation3], %s103_s22  ;;  %s339_s3 = scalar_lea.hbm %s537_s27, 64 }
  0x17   : > { %p340_p3 = scmp.ne.s32.totalorder %s537_s27, %s339_s3  ;;  %p341_p5 = pneg %p543_p0 }
  0x18   : > { %s344_s12 = scalar_lea.hbm %s640_s0, 128  ;;  %p345_p4 = scmp.lt.u32.totalorder %s537_s27, %s640_s0 }
  0x19   : > { %p342_p6 = pnand %p341_p5, %p340_p3  ;;  %p346_p10 = scmp.lt.u32.totalorder %s344_s12, %s339_s3 }
  0x1a   : > { %p348_p12 = scmp.lt.u32.totalorder %s339_s3, %s537_s27 }
  0x1b   : > { %p343_p7 = pneg %p342_p6  ;;  %p347_p13 = por %p346_p10, %p345_p4 }
  0x1d   : > { %p349_p1 = por %p348_p12, %p347_p13 }
  0x1f   : > { %p350_p2 = pnand %p349_p1, %p343_p7 }
  0x21   : > { %353 = shalt.err (!%p350_p2)
}
  0x22   : > { %s354_s16 = scalar_lea.vmem %s539_s29, 64  ;;  %s453_s17 = smov [#allocation2]  }
  0x23   : > { %p355_p3 = scmp.ne.s32.totalorder %s539_s29, %s354_s16  ;;  %s359_s22 = sshll.u32 %s453_s17, 4  ;;  %s360_s22 = int_to_ptr.vmem [resolvable:$false] %s359_s22 }
  0x24   : > { %s361_s23 = scalar_lea.vmem %s360_s22, 128  ;;  %p362_p9 = scmp.lt.s32.totalorder %s539_s29, %s360_s22 }
  0x25   : > { %p357_p6 = pnand %p355_p3, %p341_p5  ;;  %p363_p4 = scmp.lt.s32.totalorder %s361_s23, %s354_s16 }
  0x27   : > { %p358_p11 = pneg %p357_p6  ;;  %p364_p10 = por %p363_p4, %p362_p9 }
  0x29   : > { %p365_p12 = pnand %p364_p10, %p358_p11 }
  0x2b   : > { %368 = shalt.err (!%p365_p12)
}
  0x2c   : > { %281 = dma.hbm_to_vmem [thread:$0]  (!%p543_p0), %s537_s27, 64, %s539_s29, %s104_s2  }
  0x2d   : > { %p648_p1 = scmp.lt.s32.totalorder %s451_s11, 3  ;;  %p649_p2 = scmp.ge.s32.totalorder %s451_s11, 1 }
  0x2f   : > { %p121_p5 = pnand %p649_p2, %p648_p1 }
  0x30   : > { %s579_s24 = sand.u32 (!%p121_p5), 1, %s435_s7  }
  0x31   : > { %124 = sbr.rel (%p121_p5) target bundleno = 197 (0xc5), region = 24  ;;  %s268_s25 = sshll.u32 (!%p121_p5), %s579_s24, 2 }
  0x32   : > { %s127_s26 = scalar_lea.sflag (!%p121_p5), [#allocation3], %s579_s24  ;;  %s130_s28 = scalar_lea.vmem (!%p121_p5), [#allocation2], %s268_s25 }
  0x38   : > { %422 = dma.done.wait (%p515_p8), %s127_s26, 64  }
  0x39   : > { %424 = vsyncadd (%p515_p8), %s127_s26, 4294967232  ;;  %v149_v0 = vld [vmem:[%s130_s28] sm:$0xf]  ;;  %s454_s27 = smov 120   ;;  %s455_s29 = smov 104   ;;  %vm164_vm0 = vcmask 60416  }
  0x3a   : > { %151 = vrot.lane.b32.xlu0 %v149_v0, %s454_s27  ;;  %159 = vrot.lane.b32.xlu1 %v149_v0, %s455_s29  ;;  %s456_s30 = smov 112   ;;  %s271_s2 = sshll.u32 %s443_s9, 6 }
  0x3b   : > { %s148_s3 = scalar_lea.vmem [#allocation5], %s268_s25  ;;  %s591_s12 = scalar_lea.hbm %s641_s1, %s271_s2 }
  0x3c   : > { %s181_s4 = sshll.u32 %s148_s3, 4  ;;  %s167_s13 = scalar_lea.sflag [#allocation4], %s579_s24  ;;  %s593_s4 = int_to_ptr.vmem [resolvable:$true] %s181_s4 }
  0x3d   : > { %s369_s15 = scalar_lea.vmem %s593_s4, 64  ;;  %p650_p9 = scmp.ne.s32.totalorder %s645_s19, 0 }
  0x3e   : > { %155 = vrot.lane.b32.xlu0 %v149_v0, %s456_s30  ;;  %p370_p8 = scmp.ne.s32.totalorder %s593_s4, %s369_s15  ;;  %s457_s9 = smov [#allocation5]  }
  0x3f   : > { %s373_s16 = sshll.u32 %s457_s9, 4  ;;  %s374_s16 = int_to_ptr.vmem [resolvable:$false] %s373_s16 }
  0x40   : > { %p371_p11 = pnand %p370_p8, %p650_p9  ;;  %s375_s17 = scalar_lea.vmem %s374_s16, 128 }
  0x41   : > { %p376_p7 = scmp.lt.s32.totalorder %s593_s4, %s374_s16  ;;  %p377_p13 = scmp.lt.s32.totalorder %s375_s17, %s369_s15 }
  0x42   : > { %p372_p0 = pneg %p371_p11 }
  0x43   : > { %p378_p3 = por %p377_p13, %p376_p7 }
  0x45   : > { %p379_p6 = pnand %p378_p3, %p372_p0 }
  0xac   : > { %v152_v1 = vpop.permute.xlu0 %151  ;;  %v160_v4 = vpop.permute.xlu1 %159 }
  0xad   : > { %v154_v2 = vadd.f32 %v152_v1, %v149_v0 }
  0xb0   : > { %v156_v3 = vpop.permute.xlu0 %155 }
  0xb1   : > { %v158_v5 = vadd.f32 %v156_v3, %v154_v2 }
  0xb3   : > { %v162_v6 = vadd.f32 %v160_v4, %v158_v5 }
  0xb5   : > { %v163_v7 = vmul.f32 0.25, %v162_v6 }
  0xb7   : > { %165 = vst.msk [vmem:[%s148_s3] sm:$0xf] %vm164_vm0, %v163_v7 }
  0xb8   : > { %382 = shalt.err (!%p379_p6)
}
  0xb9   : > { %s383_s22 = scalar_lea.hbm %s591_s12, 64  ;;  %s387_s25 = scalar_lea.hbm %s641_s1, 128 }
  0xba   : > { %p384_p4 = scmp.ne.s32.totalorder %s591_s12, %s383_s22  ;;  %p388_p1 = scmp.lt.u32.totalorder %s591_s12, %s641_s1 }
  0xbb   : > { %p389_p2 = scmp.lt.u32.totalorder %s387_s25, %s383_s22  ;;  %p391_p8 = scmp.lt.u32.totalorder %s383_s22, %s591_s12 }
  0xbc   : > { %p385_p10 = pnand %p384_p4, %p650_p9 }
  0xbd   : > { %p390_p5 = por %p389_p2, %p388_p1 }
  0xbe   : > { %p386_p12 = pneg %p385_p10 }
  0xbf   : > { %p392_p11 = por %p391_p8, %p390_p5 }
  0xc1   : > { %p393_p0 = pnand %p392_p11, %p386_p12 }
  0xc3   : > { %396 = shalt.err (!%p393_p0)
}
  0xc4   : > { %276 = dma.vmem_to_hbm [thread:$0]  (%p650_p9), %s593_s4, 64, %s591_s12, %s167_s13  }
  0xc5 PF: > { %s193_s27 = sand.u32 1, %s431_s6   ;;  %p651_p7 = scmp.ne.s32.totalorder %s646_s21, 0 }
  0xc6   : > { %p652_p13 = scmp.ge.s32.totalorder %s451_s11, 2  ;;  %s194_s29 = scalar_lea.sflag [#allocation4], %s193_s27 }
  0xc8   : > { %p283_p3 = pnand %p652_p13, %p651_p7 }
  0xca   : > { %426 = dma.done.wait (!%p283_p3), %s194_s29, 64  }
  0xcb   : > { %428 = vsyncadd (!%p283_p3), %s194_s29, 4294967232  ;;  %s17_s11 = sadd.s32 1, %s451_s11   ;;  %s653_s6 = smov %s435_s7 }
  0xcc   : > { %p14_p6 = scmp.ge.s32.totalorder %s17_s11, 4   ;;  %s654_s7 = smov %s439_s8 }
  0xcd   : > { %s655_s8 = smov %s524_s20  ;;  %s656_s9 = smov %s447_s10 }
  0xce   : > { %s657_s10 = smov %s659_s14  ;;  %16 = sbr.rel (!%p14_p6) target bundleno = 6 (0x6), region = 69 }
  0xd5   :  { %199 = vsyncpa [#allocation3], 1 }
  0xd6   :  { %201 = vsyncpa [#allocation3 + $0x1], 1 }
  0xd7   :  { %202 = vsyncpa [#allocation4], 1 }
  0xd8   :  { %204 = vsyncpa [#allocation4 + $0x1], 1 }

</bundles_post_ra>
